<compile_context>
chip_gen: v5e
topology: v5e:2x2
jax: 0.10.0
libtpu: 0.0.40
codegen_flags: <defaults>
</compile_context>

<pallas_src>
import jax
import jax.numpy as jnp
from jax.experimental import pallas as pl
from jax.experimental.pallas import tpu as pltpu


_LANE = 512                      # lane-dense last dim (multiple of 128)
_TARGET_TILE_BYTES = 2 * 1024 * 1024   # ~2 MiB per buffer


def _prelu_kernel(alpha_ref, x_ref, o_ref):
    # alpha_ref: (1,) f32 scalar in SMEM; x_ref/o_ref: (block_rows, LANE) VMEM tile.
    a = alpha_ref[0]
    x = x_ref[...]
    neg = (a * x.astype(jnp.float32)).astype(x.dtype)
    o_ref[...] = jnp.where(x > 0, x, neg)


def _sublane_multiple(dtype):
    # f32 -> 8, bf16 -> 16, int8/fp8 -> 32 (packed-sublane alignment).
    itemsize = jnp.dtype(dtype).itemsize
    return max(8, 32 // itemsize)


def prelu_pallas(x, alpha):
    """PReLU with a single scalar alpha, elementwise over any-shaped input x."""
    orig_shape = x.shape
    dtype = x.dtype
    itemsize = jnp.dtype(dtype).itemsize
    total = x.size

    lane = _LANE
    sub = _sublane_multiple(dtype)

    # Rows needed to cover the flattened tensor at lane-dense width.
    rows = -(-total // lane)

    # Target ~2 MiB per buffer, rounded to the packed-sublane multiple.
    target_rows = max(sub, _TARGET_TILE_BYTES // (lane * itemsize))
    target_rows = (target_rows // sub) * sub
    rows_rounded = -(-rows // sub) * sub
    block_rows = min(target_rows, rows_rounded)

    # Pad rows up to a multiple of the block so the grid exactly tiles it.
    grid_rows = -(-rows // block_rows) * block_rows
    padded_total = grid_rows * lane

    flat = x.reshape(-1)
    if padded_total != total:
        flat = jnp.pad(flat, (0, padded_total - total))
    x2d = flat.reshape(grid_rows, lane)

    alpha_arr = jnp.asarray(alpha, dtype=jnp.float32).reshape((1,))

    grid = (grid_rows // block_rows,)
    out2d = pl.pallas_call(
        _prelu_kernel,
        out_shape=jax.ShapeDtypeStruct((grid_rows, lane), dtype),
        grid=grid,
        in_specs=[
            pl.BlockSpec(memory_space=pltpu.MemorySpace.SMEM),   # alpha scalar
            pl.BlockSpec((block_rows, lane), lambda i: (i, 0)),  # x tile
        ],
        out_specs=pl.BlockSpec((block_rows, lane), lambda i: (i, 0)),
        compiler_params=pltpu.CompilerParams(
            dimension_semantics=("parallel",)   # shards grid across TCs on v7x
        ),
    )(alpha_arr, x2d)

    out_flat = out2d.reshape(-1)
    if padded_total != total:
        out_flat = out_flat[:total]
    return out_flat.reshape(orig_shape)


if __name__ == "__main__":
    key = jax.random.PRNGKey(0)
    # Small NCHW input consistent with a conv feature map.
    x = jax.random.normal(key, (2, 4, 16, 16), dtype=jnp.float32)

    # nn.PReLU() default init: single parameter alpha = 0.25 (deterministic).
    alpha = jnp.float32(0.25)

    y = prelu_pallas(x, alpha)
    jax.block_until_ready(y)

    # Reference check against plain JAX PReLU semantics.
    y_ref = jnp.where(x > 0, x, alpha * x)
    assert y.shape == x.shape
    assert jnp.allclose(y, y_ref, atol=1e-6), "mismatch vs reference"

    print("KERNEL_OK")
</pallas_src>

<mosaic_0001>
module attributes {stable_mosaic.version = 11 : i64} {
  func.func @_prelu_kernel(%arg0: i32, %arg1: memref<1xf32, #tpu.memory_space<smem>>, %arg2: memref<8x512xf32, #tpu.memory_space<vmem>>, %arg3: memref<8x512xf32, #tpu.memory_space<vmem>>) attributes {dimension_semantics = [#tpu.dimension_semantics<parallel>], iteration_bounds = array<i64: 1>, scalar_prefetch = 0 : i64, scratch_operands = 0 : i64, tpu.core_type = #tpu.core_type<tc>, window_params = [{transform_indices = @transform_0, window_bounds = array<i64: 1>}, {transform_indices = @transform_1, window_bounds = array<i64: 8, 512>}, {transform_indices = @transform_2, window_bounds = array<i64: 8, 512>}]} {
    %c0 = arith.constant 0 : index
    %0 = memref.load %arg1[%c0] : memref<1xf32, #tpu.memory_space<smem>>
    %c0_0 = arith.constant 0 : index
    %c0_1 = arith.constant 0 : index
    %1 = vector.load %arg2[%c0_0, %c0_1] : memref<8x512xf32, #tpu.memory_space<vmem>>, vector<8x512xf32>
    %2 = vector.broadcast %0 : f32 to vector<8x512xf32>
    %3 = arith.mulf %2, %1 : vector<8x512xf32>
    %cst = arith.constant 0.000000e+00 : f32
    %4 = vector.broadcast %cst : f32 to vector<8x512xf32>
    %5 = arith.cmpf ogt, %1, %4 : vector<8x512xf32>
    %6 = arith.select %5, %1, %3 : vector<8x512xi1>, vector<8x512xf32>
    %c0_2 = arith.constant 0 : index
    %c0_3 = arith.constant 0 : index
    %7 = vector.load %arg3[%c0_2, %c0_3] : memref<8x512xf32, #tpu.memory_space<vmem>>, vector<8x512xf32>
    tpu.vector_store %arg3[%c0_2, %c0_3], %6 {strides = array<i32>} : memref<8x512xf32, #tpu.memory_space<vmem>>, vector<8x512xf32>,
    return
  }
  func.func @transform_0(%arg0: i32) -> i32 {
    %c0_i32 = arith.constant 0 : i32
    %c0_i32_0 = arith.constant 0 : i32
    return %c0_i32 : i32
  }
  func.func @transform_1(%arg0: i32) -> (i32, i32) {
    %c0_i32 = arith.constant 0 : i32
    %c0_i32_0 = arith.constant 0 : i32
    return %arg0, %c0_i32 : i32, i32
  }
  func.func @transform_2(%arg0: i32) -> (i32, i32) {
    %c0_i32 = arith.constant 0 : i32
    %c0_i32_0 = arith.constant 0 : i32
    return %arg0, %c0_i32 : i32, i32
  }
}

</mosaic_0001>

<bundles_post_ra>
// kernel: tpu_custom_call.1
= control target key start
LH: loop header
LB: loop body
LE: loop exit
PB: predicated region body
PF: predicated region fallthrough
CT: control target
= control target key end

     0   :  { %8 = vsyncpa [#allocation4], 0  ;;  %s146_s0 = inlined_call_operand.<no memory space> [shape: f32[1], index: 0, kind: input, shape index: {}]   ;;  %s147_s1 = inlined_call_operand.hbm [shape: f32[8,512], index: 1, kind: input, shape index: {}]   ;;  %s148_s2 = inlined_call_operand.hbm [shape: f32[8,512], index: 2, kind: output, shape index: {}]  }
   0x1   :  { %9 = vsyncpa [#allocation5], 0  ;;  %s17_s11 = sshll.u32 %s147_s1, 4  ;;  %s120_s12 = smov [#allocation3]   ;;  %s18_s11 = int_to_ptr.hbm [resolvable:$true] %s17_s11 }
   0x2   :  { %s19_s13 = sshll.u32 %s120_s12, 4  ;;  %s20_s13 = int_to_ptr.vmem [resolvable:$true] %s19_s13 }
   0x3   :  { %22 = dma.hbm_to_vmem [thread:$0]  %s18_s11, 512, %s20_s13, [#allocation4]  }
   0x4   :  { %116 = dma.done.wait [#allocation4], 512  }
   0x5   :  { %117 = vsyncadd [#allocation4], 4294966784  ;;  %v32_v0 = vstv %s146_s0  ;;  %v28_v1 = vld [vmem:[#allocation3] sm:$0xff]  ;;  %v29_v2 = vld [vmem:[#allocation3 + $0x8] sm:$0xff]  ;;  %s121_s1 = smov [#allocation6]   ;;  %s56_s19 = sshll.u32 %s148_s2, 4  ;;  %s57_s19 = int_to_ptr.hbm [resolvable:$true] %s56_s19 }
   0x6   :  { %v30_v3 = vld [vmem:[#allocation3 + $0x10] sm:$0xff]  ;;  %v33_v4 = vmul.f32 %v32_v0, %v28_v1  ;;  %vm37_vm0 = vcmp.gt.f32.partialorder %v28_v1, 0.0  ;;  %v34_v5 = vmul.f32 %v32_v0, %v29_v2  ;;  %vm38_vm1 = vcmp.gt.f32.partialorder %v29_v2, 0.0  ;;  %v31_v6 = vld [vmem:[#allocation3 + $0x18] sm:$0xff]  ;;  %s54_s16 = sshll.u32 %s121_s1, 4  ;;  %s55_s16 = int_to_ptr.vmem [resolvable:$true] %s54_s16 }
   0x7   :  { %v35_v7 = vmul.f32 %v32_v0, %v30_v3  ;;  %vm39_vm2 = vcmp.gt.f32.partialorder %v30_v3, 0.0  ;;  %v36_v8 = vmul.f32 %v32_v0, %v31_v6  ;;  %vm40_vm3 = vcmp.gt.f32.partialorder %v31_v6, 0.0 }
   0x8   :  { %v41_v9 = vsel %vm37_vm0, %v28_v1, %v33_v4  ;;  %v42_v10 = vsel %vm38_vm1, %v29_v2, %v34_v5 }
   0x9   :  { %45 = vst [vmem:[#allocation6] sm:$0xff] %v41_v9  ;;  %v43_v11 = vsel %vm39_vm2, %v30_v3, %v35_v7  ;;  %v44_v12 = vsel %vm40_vm3, %v31_v6, %v36_v8 }
   0xa   :  { %46 = vst [vmem:[#allocation6 + $0x8] sm:$0xff] %v42_v10 }
   0xb   :  { %47 = vst [vmem:[#allocation6 + $0x10] sm:$0xff] %v43_v11 }
   0xc   :  { %48 = vst [vmem:[#allocation6 + $0x18] sm:$0xff] %v44_v12 }
   0xd   :  { %59 = dma.vmem_to_hbm [thread:$0]  %s55_s16, 512, %s57_s19, [#allocation5]  }
   0xe   :  { %118 = dma.done.wait [#allocation5], 512  }
   0xf   :  { %119 = vsyncadd [#allocation5], 4294966784 }
  0x10   :  { %64 = vsyncpa [#allocation4], 1 }
  0x11   :  { %65 = vsyncpa [#allocation5], 1 }

</bundles_post_ra>
